<compile_context>
chip_gen: v5e
topology: v5e:2x2
jax: 0.10.0
libtpu: 0.0.40
codegen_flags: <defaults>
</compile_context>

<pallas_src>
import numpy as np
import jax
import jax.numpy as jnp
from jax.experimental import pallas as pl
from jax.experimental.pallas import tpu as pltpu

_LANE = 128
_SUBLANE = 8
_MAX_COLS = 128 * 64            # cap lane width at 8192 columns
_TARGET_BLOCK_BYTES = 2 << 20   # ~2 MiB/buffer; 4 double-buffered copies ≈ 8 MiB


def _copy_kernel(x_ref, o_ref):
    # Elementwise identity on the current lane-dense block.
    o_ref[...] = x_ref[...]


def _pick_layout(total, itemsize):
    """Pick a lane-dense 2D layout (rows, cols, row_tile) for a flat copy."""
    cols = 0
    c = _LANE
    limit = min(total, _MAX_COLS)
    while c <= limit:
        if total % c == 0:
            cols = c
        c += _LANE
    if cols == 0:
        return None  # total not a multiple of 128 -> ragged fallback
    rows = total // cols
    # Row tile sized for ~_TARGET_BLOCK_BYTES, rounded to a multiple of 8 sublanes.
    row_tile = _TARGET_BLOCK_BYTES // (cols * itemsize)
    row_tile = max(_SUBLANE, (row_tile // _SUBLANE) * _SUBLANE)
    row_tile = min(row_tile, rows)
    return rows, cols, row_tile


def rnn_position_forward(x):
    """Identity forward of RnnPosition, streamed through a Pallas TPU copy kernel.

    x: any-shaped array; returns an array identical to x (shape, dtype, values).
    """
    if x.size == 0:
        return x

    orig_shape = x.shape
    total = x.size
    itemsize = jnp.dtype(x.dtype).itemsize

    layout = _pick_layout(total, itemsize)
    if layout is not None:
        rows, cols, row_tile = layout
        col_tile = cols
    else:
        # total not a multiple of 128: single-row lane-dense layout with a
        # ragged (masked) last block. The 1-sublane block pads 8x in VMEM, so
        # target 1/8 of the usual block bytes to keep the pipeline in budget.
        rows, row_tile = 1, 1
        cols = total
        col_tile = (_TARGET_BLOCK_BYTES // _SUBLANE) // itemsize
        col_tile = max(_LANE, (col_tile // _LANE) * _LANE)
        col_tile = min(col_tile, pl.cdiv(total, _LANE) * _LANE)

    x2d = x.reshape(rows, cols)
    grid = (pl.cdiv(rows, row_tile), pl.cdiv(cols, col_tile))

    y2d = pl.pallas_call(
        _copy_kernel,
        out_shape=jax.ShapeDtypeStruct((rows, cols), x.dtype),
        grid=grid,
        in_specs=[pl.BlockSpec((row_tile, col_tile), lambda i, j: (i, j))],
        out_specs=pl.BlockSpec((row_tile, col_tile), lambda i, j: (i, j)),
        cost_estimate=pl.CostEstimate(
            flops=0, transcendentals=0, bytes_accessed=2 * x.nbytes),
        compiler_params=pltpu.CompilerParams(
            dimension_semantics=("parallel", "parallel")),
    )(x2d)

    return y2d.reshape(orig_shape)


if __name__ == "__main__":
    key = jax.random.PRNGKey(0)
    batch, seq, hidden = 2, 8, 32
    x = jax.random.normal(key, (batch, seq, hidden), dtype=jnp.float32)

    y = rnn_position_forward(x)
    y = jax.block_until_ready(y)

    x_host = np.asarray(jax.device_get(x))
    y_host = np.asarray(jax.device_get(y))

    # Verify exact identity semantics (shape, dtype, values).
    assert y_host.shape == x_host.shape
    assert y_host.dtype == x_host.dtype
    assert np.array_equal(y_host, x_host)

    print("KERNEL_OK")
</pallas_src>

<mosaic_0001>
module attributes {stable_mosaic.version = 11 : i64} {
  func.func @_copy_kernel(%arg0: i32, %arg1: i32, %arg2: memref<1x512xf32, #tpu.memory_space<vmem>>, %arg3: memref<1x512xf32, #tpu.memory_space<vmem>>) attributes {dimension_semantics = [#tpu.dimension_semantics<parallel>, #tpu.dimension_semantics<parallel>], iteration_bounds = array<i64: 1, 1>, scalar_prefetch = 0 : i64, scratch_operands = 0 : i64, tpu.core_type = #tpu.core_type<tc>, window_params = [{transform_indices = @transform_0, window_bounds = array<i64: 1, 512>}, {transform_indices = @transform_1, window_bounds = array<i64: 1, 512>}]} {
    %c0 = arith.constant 0 : index
    %c0_0 = arith.constant 0 : index
    %0 = vector.load %arg2[%c0, %c0_0] : memref<1x512xf32, #tpu.memory_space<vmem>>, vector<1x512xf32>
    %c0_1 = arith.constant 0 : index
    %c0_2 = arith.constant 0 : index
    %1 = vector.load %arg3[%c0_1, %c0_2] : memref<1x512xf32, #tpu.memory_space<vmem>>, vector<1x512xf32>
    tpu.vector_store %arg3[%c0_1, %c0_2], %0 {strides = array<i32>} : memref<1x512xf32, #tpu.memory_space<vmem>>, vector<1x512xf32>,
    return
  }
  func.func @transform_0(%arg0: i32, %arg1: i32) -> (i32, i32) {
    %c0_i32 = arith.constant 0 : i32
    return %arg0, %arg1 : i32, i32
  }
  func.func @transform_1(%arg0: i32, %arg1: i32) -> (i32, i32) {
    %c0_i32 = arith.constant 0 : i32
    return %arg0, %arg1 : i32, i32
  }
}

</mosaic_0001>

<bundles_post_ra>
// kernel: tpu_custom_call.1
= control target key start
LH: loop header
LB: loop body
LE: loop exit
PB: predicated region body
PF: predicated region fallthrough
CT: control target
= control target key end

     0   :  { %6 = vsyncpa [#allocation3], 0  ;;  %s118_s0 = inlined_call_operand.hbm [shape: f32[1,512], index: 0, kind: input, shape index: {}]   ;;  %s119_s1 = inlined_call_operand.hbm [shape: f32[1,512], index: 1, kind: output, shape index: {}]  }
   0x1   :  { %7 = vsyncpa [#allocation4], 0  ;;  %s13_s8 = sshll.u32 %s118_s0, 4  ;;  %s100_s9 = smov [#allocation2]   ;;  %s14_s8 = int_to_ptr.hbm [resolvable:$true] %s13_s8 }
   0x2   :  { %s15_s10 = sshll.u32 %s100_s9, 4  ;;  %s16_s10 = int_to_ptr.vmem [resolvable:$true] %s15_s10 }
   0x3   :  { %18 = dma.hbm_to_vmem [thread:$0]  %s14_s8, 64, %s16_s10, [#allocation3]  }
   0x4   :  { %96 = dma.done.wait [#allocation3], 64  }
   0x5   :  { %97 = vsyncadd [#allocation3], 4294967232  ;;  %v24_v0 = vlaneseq  ;;  %s101_s11 = smov [#allocation5]   ;;  %s36_s15 = sshll.u32 %s119_s1, 4  ;;  %v23_v1 = vld [vmem:[#allocation2] sm:$0xf]  ;;  %s37_s15 = int_to_ptr.hbm [resolvable:$true] %s36_s15 }
   0x6   :  { %s34_s12 = sshll.u32 %s101_s11, 4  ;;  %s35_s12 = int_to_ptr.vmem [resolvable:$true] %s34_s12 }
   0x7   :  { %vm26_vm0 = vcmp.lt.s32.totalorder %v24_v0, 512 }
   0x8   :  { %28 = vst.msk [vmem:[#allocation5] sm:$0xf] %vm26_vm0, %v23_v1 }
   0x9   :  { %39 = dma.vmem_to_hbm [thread:$0]  %s35_s12, 64, %s37_s15, [#allocation4]  }
   0xa   :  { %98 = dma.done.wait [#allocation4], 64  }
   0xb   :  { %99 = vsyncadd [#allocation4], 4294967232 }
   0xc   :  { %44 = vsyncpa [#allocation3], 1 }
   0xd   :  { %45 = vsyncpa [#allocation4], 1 }

</bundles_post_ra>
